<compile_context>
chip_gen: v7x
topology: tpu7x:2x2x1
jax: 0.10.0
libtpu: 0.0.40
codegen_flags: <defaults>
</compile_context>

<pallas_src>
import jax
import jax.numpy as jnp
from jax.experimental import pallas as pl
from jax.experimental.pallas import tpu as pltpu


def _round_up(x, m):
    return ((x + m - 1) // m) * m


def _s2d_down_kernel(patches_ref, w_ref, bias_ref, o_ref):
    # patches_ref: (tm, K)   bf16 -- flattened (ph, pw, Cin) patch rows
    # w_ref:       (K, Cout) bf16 -- conv weight with BN(eval) scale folded in
    # bias_ref:    (1, Cout) fp32 -- folded conv-bias + BN shift
    acc = jnp.dot(patches_ref[...], w_ref[...],
                  preferred_element_type=jnp.float32)      # MXU, fp32 acc
    o_ref[...] = acc + bias_ref[...]                       # VPU epilogue


def s2d_down_forward(x_nchw, params, patch_size, padding=0, *, eps=1e-5,
                     tile_m=512):
    """Forward of S2DDown: y = BatchNorm2d(Conv2d(x, k=p, stride=p, pad=padding))."""
    p = patch_size
    N, Cin, H, W = x_nchw.shape
    Cout = params["conv_weight"].shape[0]

    Hp, Wp = H + 2 * padding, W + 2 * padding
    Ho = (Hp - p) // p + 1
    Wo = (Wp - p) // p + 1
    M = N * Ho * Wo                      # batch folded into the row axis
    K = p * p * Cin

    # ---- fold conv bias + BatchNorm2d (eval) -------------------------------
    # TODO(synk): BatchNorm running-stat updates (train mode) are not modeled;
    # eval-mode stats are folded into the weight/bias below.
    s = (params["bn_gamma"] / jnp.sqrt(params["bn_var"] + eps)).astype(jnp.float32)
    bias = (s * (params["conv_bias"].astype(jnp.float32) - params["bn_mean"])
            + params["bn_beta"]).reshape(1, Cout).astype(jnp.float32)
    # weight (Cout, Cin, p, p) -> (K, Cout), flatten order (ph, pw, Cin);
    # BN scale folded into the weight (one fewer VPU op + one fewer operand).
    w_mat = (jnp.transpose(params["conv_weight"].astype(jnp.float32), (2, 3, 1, 0))
             .reshape(K, Cout) * s[None, :]).astype(jnp.bfloat16)

    # ---- patchify: non-overlapping p x p patches become matmul rows ---------
    x = x_nchw.astype(jnp.float32)
    if padding:
        x = jnp.pad(x, ((0, 0), (0, 0), (padding, padding), (padding, padding)))
    x = x[:, :, :Ho * p, :Wo * p]                     # drop remainder (floor conv)
    patches = jnp.transpose(
        x.reshape(N, Cin, Ho, p, Wo, p), (0, 2, 4, 3, 5, 1)
    ).reshape(M, K).astype(jnp.bfloat16)              # bf16 halves input DMA

    # ---- choose the row tile (bounded VMEM, bf16-friendly multiple of 16) ---
    budget = 8 << 20                                  # per-step VMEM target
    tm_cap = max(64, budget // (2 * (2 * K + 4 * Cout)))
    tm = min(tile_m, tm_cap, _round_up(M, 16))
    tm = max(16, (tm // 16) * 16)
    M_pad = _round_up(M, tm)
    if M_pad != M:
        patches = jnp.pad(patches, ((0, M_pad - M), (0, 0)))
    n_m = M_pad // tm

    out_flat = pl.pallas_call(
        _s2d_down_kernel,
        out_shape=jax.ShapeDtypeStruct((M_pad, Cout), jnp.float32),
        grid_spec=pltpu.PrefetchScalarGridSpec(
            num_scalar_prefetch=0,
            grid=(n_m,),
            in_specs=[
                pl.BlockSpec((tm, K), lambda m: (m, 0)),     # patch rows
                pl.BlockSpec((K, Cout), lambda m: (0, 0)),   # fused weight
                pl.BlockSpec((1, Cout), lambda m: (0, 0)),   # fused bias
            ],
            out_specs=pl.BlockSpec((tm, Cout), lambda m: (m, 0)),
        ),
        compiler_params=pltpu.CompilerParams(
            dimension_semantics=("parallel",)),
    )(patches, w_mat, bias)

    out = out_flat[:M].reshape(N, Ho, Wo, Cout)
    return jnp.transpose(out, (0, 3, 1, 2))           # back to NCHW


def s2d_down_reference(x_nchw, params, patch_size, padding=0, eps=1e-5):
    """Pure-JAX reference mirroring the PyTorch module in eval mode."""
    p = patch_size
    y = jax.lax.conv_general_dilated(
        x_nchw.astype(jnp.float32), params["conv_weight"].astype(jnp.float32),
        window_strides=(p, p),
        padding=[(padding, padding), (padding, padding)],
        dimension_numbers=("NCHW", "OIHW", "NCHW"))
    y = y + params["conv_bias"][None, :, None, None]
    s = params["bn_gamma"] / jnp.sqrt(params["bn_var"] + eps)
    y = (y - params["bn_mean"][None, :, None, None]) * s[None, :, None, None] \
        + params["bn_beta"][None, :, None, None]
    return y


if __name__ == "__main__":
    N, in_dim, out_dim, H, W = 2, 4, 32, 16, 16
    patch_size, padding = 2, 0

    key = jax.random.PRNGKey(0)
    ks = jax.random.split(key, 8)
    params = {
        "conv_weight": jax.random.normal(
            ks[0], (out_dim, in_dim, patch_size, patch_size), jnp.float32) * 0.2,
        "conv_bias": jax.random.normal(ks[1], (out_dim,), jnp.float32) * 0.1,
        "bn_gamma": 1.0 + 0.1 * jax.random.normal(ks[2], (out_dim,), jnp.float32),
        "bn_beta": 0.1 * jax.random.normal(ks[3], (out_dim,), jnp.float32),
        "bn_mean": 0.1 * jax.random.normal(ks[4], (out_dim,), jnp.float32),
        "bn_var": 1.0 + 0.1 * jnp.abs(jax.random.normal(ks[5], (out_dim,), jnp.float32)),
    }
    x = jax.random.normal(ks[6], (N, in_dim, H, W), jnp.float32)

    out = jax.block_until_ready(
        s2d_down_forward(x, params, patch_size, padding))
    ref = s2d_down_reference(x, params, patch_size, padding)

    assert out.shape == ref.shape, (out.shape, ref.shape)
    # bf16 matmul inputs (fp32 accumulation) -> slightly looser tolerance.
    max_err = float(jnp.max(jnp.abs(out - ref)))
    assert jnp.allclose(out, ref, atol=3e-2, rtol=3e-2), max_err
    print("KERNEL_OK")
</pallas_src>

<mosaic_0001>
module attributes {stable_mosaic.version = 11 : i64} {
  func.func @_s2d_down_kernel(%arg0: i32, %arg1: memref<128x16xbf16, #tpu.memory_space<vmem>>, %arg2: memref<16x32xbf16, #tpu.memory_space<vmem>>, %arg3: memref<1x32xf32, #tpu.memory_space<vmem>>, %arg4: memref<128x32xf32, #tpu.memory_space<vmem>>) attributes {dimension_semantics = [#tpu.dimension_semantics<parallel>], iteration_bounds = array<i64: 1>, scalar_prefetch = 0 : i64, scratch_operands = 0 : i64, tpu.core_type = #tpu.core_type<tc>, window_params = [{transform_indices = @transform_0, window_bounds = array<i64: 128, 16>}, {pipeline_mode = #tpu.pipeline_mode<synchronous>, transform_indices = @transform_1, window_bounds = array<i64: 16, 32>}, {pipeline_mode = #tpu.pipeline_mode<synchronous>, transform_indices = @transform_2, window_bounds = array<i64: 1, 32>}, {transform_indices = @transform_3, window_bounds = array<i64: 128, 32>}]} {
    %c0 = arith.constant 0 : index
    %c0_0 = arith.constant 0 : index
    %0 = vector.load %arg1[%c0, %c0_0] : memref<128x16xbf16, #tpu.memory_space<vmem>>, vector<128x16xbf16>
    %c0_1 = arith.constant 0 : index
    %c0_2 = arith.constant 0 : index
    %1 = vector.load %arg2[%c0_1, %c0_2] : memref<16x32xbf16, #tpu.memory_space<vmem>>, vector<16x32xbf16>
    %cst = arith.constant dense<0.000000e+00> : vector<128x32xf32>
    %2 = tpu.matmul %0, %1, %cst {dimension_numbers = #tpu.dot_dimension_numbers<[1], [0], [0], [1], [0, 0, 1, 1], [], []>} : vector<128x16xbf16>, vector<16x32xbf16>, vector<128x32xf32> -> vector<128x32xf32>
    %c0_3 = arith.constant 0 : index
    %c0_4 = arith.constant 0 : index
    %3 = vector.load %arg3[%c0_3, %c0_4] : memref<1x32xf32, #tpu.memory_space<vmem>>, vector<1x32xf32>
    %4 = vector.broadcast %3 : vector<1x32xf32> to vector<128x32xf32>
    %5 = arith.addf %2, %4 : vector<128x32xf32>
    %c0_5 = arith.constant 0 : index
    %c0_6 = arith.constant 0 : index
    %6 = vector.load %arg4[%c0_5, %c0_6] : memref<128x32xf32, #tpu.memory_space<vmem>>, vector<128x32xf32>
    tpu.vector_store %arg4[%c0_5, %c0_6], %5 {strides = array<i32>} : memref<128x32xf32, #tpu.memory_space<vmem>>, vector<128x32xf32>,
    return
  }
  func.func @transform_0(%arg0: i32) -> (i32, i32) {
    %c0_i32 = arith.constant 0 : i32
    %c0_i32_0 = arith.constant 0 : i32
    return %arg0, %c0_i32 : i32, i32
  }
  func.func @transform_1(%arg0: i32) -> (i32, i32) {
    %c0_i32 = arith.constant 0 : i32
    %c0_i32_0 = arith.constant 0 : i32
    %c0_i32_1 = arith.constant 0 : i32
    return %c0_i32, %c0_i32_0 : i32, i32
  }
  func.func @transform_2(%arg0: i32) -> (i32, i32) {
    %c0_i32 = arith.constant 0 : i32
    %c0_i32_0 = arith.constant 0 : i32
    %c0_i32_1 = arith.constant 0 : i32
    return %c0_i32, %c0_i32_0 : i32, i32
  }
  func.func @transform_3(%arg0: i32) -> (i32, i32) {
    %c0_i32 = arith.constant 0 : i32
    %c0_i32_0 = arith.constant 0 : i32
    return %arg0, %c0_i32 : i32, i32
  }
}

</mosaic_0001>

<bundles_post_ra>
// kernel: tpu_custom_call.1
= control target key start
LH: loop header
LB: loop body
LE: loop exit
PB: predicated region body
PF: predicated region fallthrough
CT: control target
= control target key end

     0   :  { %vm86_vm0 = vcmask 130048   ;;  %vm208_vm1 = vcmask 261120   ;;  %s407_s1 = inlined_call_operand.vmem [shape: bf16[16,32], index: 1, kind: input, shape index: {}]   ;;  %s408_s0 = inlined_call_operand.vmem [shape: bf16[128,16], index: 0, kind: input, shape index: {}]   ;;  %s409_s2 = inlined_call_operand.vmem [shape: f32[1,32], index: 2, kind: input, shape index: {}]   ;;  %s410_s3 = inlined_call_operand.vmem [shape: f32[128,32], index: 3, kind: output, shape index: {}]  }
   0x1   :  { %v276_v0 = vld [vmem:[%s407_s1] sm:$0xff]   ;;  %v279_v3 = vld [vmem:[%s408_s0 + $0x8] sm:$0xff]   ;;  %v281_v5 = vld [vmem:[%s408_s0 + $0x10] sm:$0xff]  }
   0x2   :  { %v277_v1 = vld [vmem:[%s408_s0] sm:$0xff]   ;;  %256 = vmatprep.subr.bf16.mxu0 %v276_v0  ;;  %274 = vmatprep.subr.bf16.mxu1 %v276_v0  ;;  %v280_v4 = vld [vmem:[%s408_s0 + $0x28] sm:$0xff]   ;;  %v282_v6 = vld [vmem:[%s408_s0 + $0x30] sm:$0xff]  }
   0x3   :  { %v278_v2 = vld [vmem:[%s408_s0 + $0x20] sm:$0xff]   ;;  %257 = vmatpush3.bf16.msra.mxu0 %v276_v0  ;;  %275 = vmatpush3.bf16.msra.mxu1 %v276_v0  ;;  %v283_v7 = vld [vmem:[%s408_s0 + $0x18] sm:$0xff]  }
   0x4   :  { %258 = vmatprep.mubr.msk.bf16.mxu0 %vm86_vm0, %v277_v1  ;;  %266 = vmatprep.mubr.msk.bf16.mxu1 %vm86_vm0, %v278_v2  ;;  %v284_v8 = vld [vmem:[%s408_s0 + $0x38] sm:$0xff]   ;;  %v229_v9 = vld [vmem:[%s409_s2] ss:$0 sm:$0xff] }
   0x6   :  { %259 = vmatmul.mubr.msk.bf16.vlgmr.msra.gmra.mrb[0].mxu0 %vm86_vm0, %v279_v3  ;;  %267 = vmatmul.mubr.msk.bf16.vlgmr.msra.gmra.mrb[0].mxu1 %vm86_vm0, %v280_v4 }
   0x7   :  { %262 = vmatprep.mubr.msk.bf16.mxu0 %vm86_vm0, %v281_v5  ;;  %270 = vmatprep.mubr.msk.bf16.mxu1 %vm86_vm0, %v282_v6 }
   0xe   :  { %263 = vmatmul.mubr.msk.bf16.gmra.mrb[4].mxu0 %vm86_vm0, %v283_v7  ;;  %271 = vmatmul.mubr.msk.bf16.gmra.mrb[4].mxu1 %vm86_vm0, %v284_v8 }
  0xd9   :  { %v260_v10 = vpop.f32.mrb[0].mxu0  ;;  %v268_v11 = vpop.f32.mrb[0].mxu1 }
  0xda   :  { %v154_v12 = vadd.f32 %v260_v10, %v229_v9  ;;  %v186_v13 = vadd.f32 %v268_v11, %v229_v9  ;;  %v145_v14 = vpop.f32.mrb[1].mxu0  ;;  %v177_v15 = vpop.f32.mrb[1].mxu1 }
  0xdb   :  { %v146_v16 = vadd.f32 %v229_v9, %v145_v14  ;;  %v178_v17 = vadd.f32 %v229_v9, %v177_v15  ;;  %v261_v18 = vpop.f32.mrb[2].mxu0  ;;  %v269_v19 = vpop.f32.mrb[2].mxu1 }
  0xdc   :  { %211 = vst.msk [vmem:[%s410_s3 + $0x10] sm:$0xff] %vm208_vm1, %v154_v12  ;;  %219 = vst.msk [vmem:[%s410_s3 + $0x50] sm:$0xff] %vm208_vm1, %v186_v13  ;;  %v157_v20 = vadd.f32 %v261_v18, %v229_v9  ;;  %v189_v21 = vadd.f32 %v269_v19, %v229_v9  ;;  %v148_v22 = vpop.f32.mrb[3].mxu0  ;;  %v180_v23 = vpop.f32.mrb[3].mxu1 }
  0xdd   :  { %209 = vst.msk [vmem:[%s410_s3] sm:$0xff] %vm208_vm1, %v146_v16  ;;  %217 = vst.msk [vmem:[%s410_s3 + $0x40] sm:$0xff] %vm208_vm1, %v178_v17  ;;  %v149_v24 = vadd.f32 %v229_v9, %v148_v22  ;;  %v181_v25 = vadd.f32 %v229_v9, %v180_v23 }
  0xde   :  { %212 = vst.msk [vmem:[%s410_s3 + $0x18] sm:$0xff] %vm208_vm1, %v157_v20  ;;  %220 = vst.msk [vmem:[%s410_s3 + $0x58] sm:$0xff] %vm208_vm1, %v189_v21 }
  0xdf   :  { %210 = vst.msk [vmem:[%s410_s3 + $0x8] sm:$0xff] %vm208_vm1, %v149_v24  ;;  %218 = vst.msk [vmem:[%s410_s3 + $0x48] sm:$0xff] %vm208_vm1, %v181_v25 }
  0xe1   :  { %v264_v26 = vpop.f32.mrb[4].mxu0  ;;  %v272_v27 = vpop.f32.mrb[4].mxu1 }
  0xe2   :  { %v170_v28 = vadd.f32 %v264_v26, %v229_v9  ;;  %v202_v29 = vadd.f32 %v272_v27, %v229_v9  ;;  %v161_v30 = vpop.f32.mrb[5].mxu0  ;;  %v193_v31 = vpop.f32.mrb[5].mxu1 }
  0xe3   :  { %v162_v32 = vadd.f32 %v229_v9, %v161_v30  ;;  %v194_v33 = vadd.f32 %v229_v9, %v193_v31  ;;  %v265_v34 = vpop.f32.mrb[6].mxu0  ;;  %v273_v35 = vpop.f32.mrb[6].mxu1 }
  0xe4   :  { %215 = vst.msk [vmem:[%s410_s3 + $0x30] sm:$0xff] %vm208_vm1, %v170_v28  ;;  %223 = vst.msk [vmem:[%s410_s3 + $0x70] sm:$0xff] %vm208_vm1, %v202_v29  ;;  %v173_v36 = vadd.f32 %v265_v34, %v229_v9  ;;  %v205_v37 = vadd.f32 %v273_v35, %v229_v9  ;;  %v164_v38 = vpop.f32.mrb[7].mxu0  ;;  %v196_v39 = vpop.f32.mrb[7].mxu1 }
  0xe5   :  { %213 = vst.msk [vmem:[%s410_s3 + $0x20] sm:$0xff] %vm208_vm1, %v162_v32  ;;  %221 = vst.msk [vmem:[%s410_s3 + $0x60] sm:$0xff] %vm208_vm1, %v194_v33  ;;  %v165_v40 = vadd.f32 %v229_v9, %v164_v38  ;;  %v197_v41 = vadd.f32 %v229_v9, %v196_v39 }
  0xe6   :  { %216 = vst.msk [vmem:[%s410_s3 + $0x38] sm:$0xff] %vm208_vm1, %v173_v36  ;;  %224 = vst.msk [vmem:[%s410_s3 + $0x78] sm:$0xff] %vm208_vm1, %v205_v37 }
  0xe7   :  { %214 = vst.msk [vmem:[%s410_s3 + $0x28] sm:$0xff] %vm208_vm1, %v165_v40  ;;  %222 = vst.msk [vmem:[%s410_s3 + $0x68] sm:$0xff] %vm208_vm1, %v197_v41 }

</bundles_post_ra>
